<compile_context>
chip_gen: v7x
topology: tpu7x:2x2x1
jax: 0.10.0
libtpu: 0.0.40
codegen_flags: <defaults>
</compile_context>

<pallas_src>
import jax
import jax.numpy as jnp
from jax.experimental import pallas as pl
from jax.experimental.pallas import tpu as pltpu


def _gru_seq_kernel(x_ref, h0_ref, wi_ref, wh_ref, b_ref, out_ref, h_scratch):
    """One grid step = `chunk` GRU timesteps.

    x_ref  : (chunk, B, D_in) inputs for this chunk (streamed per grid step)
    h0_ref : (B, H)           initial hidden state (used only at grid step 0)
    wi_ref : (D_in, 3H)       fused input weights  (constant block -> resident)
    wh_ref : (H, 3H)          fused hidden weights (constant block -> resident)
    b_ref  : (1, 3H)          fused bias
    out_ref: (chunk, B, H)    per-step hidden states for this chunk
    h_scratch: (B, H) f32     hidden state carried across grid steps
    """
    chunk, B, _ = x_ref.shape
    H = h0_ref.shape[-1]
    mxu_dtype = wi_ref.dtype  # bf16 fast path (or f32 if requested)

    # Initialize the carried hidden state exactly once.
    @pl.when(pl.program_id(0) == 0)
    def _():
        h_scratch[...] = h0_ref[...].astype(jnp.float32)

    # Hoist the input projection for the whole chunk into a single MXU pass:
    # (chunk*B, D_in) @ (D_in, 3H).  Better M-fill than B rows per step.
    x_all = x_ref[...].reshape(chunk * B, -1).astype(mxu_dtype)
    gx_all = jnp.dot(x_all, wi_ref[...], preferred_element_type=jnp.float32)
    gx_all = gx_all + b_ref[...].astype(jnp.float32)  # one fused bias add

    wh = wh_ref[...]
    h = h_scratch[...]                                 # f32 carry
    for s in range(chunk):                             # static unroll, small
        gx = gx_all[s * B:(s + 1) * B]                 # (B, 3H), sublane-aligned
        gh = jnp.dot(h.astype(mxu_dtype), wh,
                     preferred_element_type=jnp.float32)
        # Gate slices are 128-lane aligned when H % 128 == 0.
        r_t = jax.nn.sigmoid(gx[:, :H] + gh[:, :H])
        z_t = jax.nn.sigmoid(gx[:, H:2 * H] + gh[:, H:2 * H])
        n_t = jnp.tanh(gx[:, 2 * H:] + r_t * gh[:, 2 * H:])
        # (1 - z)*n + z*h == n + z*(h - n): one fewer VPU op per step.
        h = n_t + z_t * (h - n_t)
        out_ref[s] = h.astype(out_ref.dtype)
    h_scratch[...] = h


def fuse_gru_params(params, mxu_dtype=jnp.bfloat16):
    """Pre-fuse per-gate weights/biases ONCE (never per step).

    Weights are stored in `mxu_dtype` (bf16 default: fast MXU path + half the
    weight DMA bytes).  Bias stays f32; all gate math is f32 in the kernel.
    """
    H = params["W_hr"].shape[0]
    w_i = jnp.concatenate(
        [params["W_ir"], params["W_iz"], params["W_in"]], axis=1).astype(mxu_dtype)
    w_h = jnp.concatenate(
        [params["W_hr"], params["W_hz"], params["W_hn"]], axis=1).astype(mxu_dtype)
    b = jnp.concatenate(
        [params["b_r"], params["b_z"], params["b_n"]]).reshape(1, 3 * H).astype(jnp.float32)
    return w_i, w_h, b


def gru_sequence_forward(xs, h0, fused_params, *, t_chunk=4):
    """Apply the GRU cell over time. xs: (T, B, D_in), h0: (B, H) -> (T, B, H)."""
    w_i, w_h, b = fused_params
    T, B, D_in = xs.shape
    _, H = h0.shape
    assert w_i.shape == (D_in, 3 * H)
    assert w_h.shape == (H, 3 * H)
    assert b.shape == (1, 3 * H)

    # Timesteps per grid step (largest divisor of T not exceeding t_chunk).
    chunk = max(1, min(t_chunk, T))
    while T % chunk:
        chunk -= 1
    grid = (T // chunk,)

    def nbytes(shape, dtype):
        n = 1
        for s in shape:
            n *= s
        return n * jnp.dtype(dtype).itemsize

    # VMEM budget from the actual buffer plan: resident weights/bias/h0,
    # double-buffered x/out chunks, f32 h scratch, plus headroom.
    # Clamped to v7x's 64 MiB physical VMEM (v5e/v6e have 128 MiB).
    resident = (nbytes(w_i.shape, w_i.dtype) + nbytes(w_h.shape, w_h.dtype)
                + nbytes(b.shape, b.dtype) + nbytes((B, H), h0.dtype))
    streamed = (nbytes((chunk, B, D_in), xs.dtype)
                + nbytes((chunk, B, H), h0.dtype))
    scratch = nbytes((B, H), jnp.float32)
    vmem_limit = int(min(max(2 * (resident + streamed) + scratch + (2 << 20),
                             4 << 20), 64 << 20))

    cost = pl.CostEstimate(
        flops=2 * T * B * (D_in + H) * 3 * H + 12 * T * B * H,
        transcendentals=3 * T * B * H,
        bytes_accessed=(nbytes(xs.shape, xs.dtype) + nbytes(h0.shape, h0.dtype)
                        + resident + nbytes((T, B, H), h0.dtype)),
    )

    return pl.pallas_call(
        _gru_seq_kernel,
        out_shape=jax.ShapeDtypeStruct((T, B, H), h0.dtype),
        grid=grid,
        in_specs=[
            pl.BlockSpec((chunk, B, D_in), lambda t: (t, 0, 0)),  # x: streamed
            pl.BlockSpec((B, H), lambda t: (0, 0)),               # h0: step 0 only
            pl.BlockSpec((D_in, 3 * H), lambda t: (0, 0)),        # W_i: resident
            pl.BlockSpec((H, 3 * H), lambda t: (0, 0)),           # W_h: resident
            pl.BlockSpec((1, 3 * H), lambda t: (0, 0)),           # b:   resident
        ],
        out_specs=pl.BlockSpec((chunk, B, H), lambda t: (t, 0, 0)),
        scratch_shapes=[pltpu.VMEM((B, H), jnp.float32)],
        compiler_params=pltpu.CompilerParams(
            dimension_semantics=("arbitrary",),  # sequential recurrence
            vmem_limit_bytes=vmem_limit),
        cost_estimate=cost,
    )(xs, h0, w_i, w_h, b)


def gru_cell_forward(x, h, fused_params):
    """Single-step cell — exactly the PyTorch module's forward(x, h)."""
    return gru_sequence_forward(x[None], h, fused_params, t_chunk=1)[0]


# ----------------------------- reference & demo -----------------------------

def init_params(key, input_dim, hidden_dim, dtype=jnp.float32):
    ks = jax.random.split(key, 9)
    return {
        "W_ir": jax.random.normal(ks[0], (input_dim, hidden_dim), dtype),
        "W_hr": jax.random.normal(ks[1], (hidden_dim, hidden_dim), dtype),
        "b_r":  jax.random.normal(ks[2], (hidden_dim,), dtype),
        "W_iz": jax.random.normal(ks[3], (input_dim, hidden_dim), dtype),
        "W_hz": jax.random.normal(ks[4], (hidden_dim, hidden_dim), dtype),
        "b_z":  jax.random.normal(ks[5], (hidden_dim,), dtype),
        "W_in": jax.random.normal(ks[6], (input_dim, hidden_dim), dtype),
        "W_hn": jax.random.normal(ks[7], (hidden_dim, hidden_dim), dtype),
        "b_n":  jax.random.normal(ks[8], (hidden_dim,), dtype),
    }


def gru_cell_reference(x, h, p, mxu_dtype=None):
    """Pure-JAX reference; if mxu_dtype is set, matmul operands are cast to it
    (mirroring the kernel's MXU input dtype) with f32 accumulation."""
    def dot(a, b):
        if mxu_dtype is not None:
            a = a.astype(mxu_dtype)
            b = b.astype(mxu_dtype)
        return jnp.dot(a, b, preferred_element_type=jnp.float32)
    r_t = jax.nn.sigmoid(dot(x, p["W_ir"]) + dot(h, p["W_hr"]) + p["b_r"])
    z_t = jax.nn.sigmoid(dot(x, p["W_iz"]) + dot(h, p["W_hz"]) + p["b_z"])
    n_t = jnp.tanh(dot(x, p["W_in"]) + r_t * dot(h, p["W_hn"]) + p["b_n"])
    return (1.0 - z_t) * n_t + z_t * h


def gru_sequence_reference(xs, h0, p, mxu_dtype=None):
    def step(h, x):
        h_next = gru_cell_reference(x, h, p, mxu_dtype)
        return h_next, h_next
    _, hs = jax.lax.scan(step, h0, xs)
    return hs


if __name__ == "__main__":
    # H multiple of 128 -> lane-dense output and vreg-aligned gate slices.
    B, INPUT_DIM, HIDDEN_DIM, T = 8, 32, 128, 8

    key = jax.random.PRNGKey(0)
    k_x, k_h, k_p, k_xs = jax.random.split(key, 4)

    x0 = jax.random.normal(k_x, (B, INPUT_DIM), jnp.float32)
    h0 = jax.random.normal(k_h, (B, HIDDEN_DIM), jnp.float32)
    xs = jax.random.normal(k_xs, (T, B, INPUT_DIM), jnp.float32)
    params = init_params(k_p, INPUT_DIM, HIDDEN_DIM)

    # 1) Single-step cell with full-f32 weights: tight match vs the exact
    #    f32 module reference (same semantics as the PyTorch forward).
    fused_f32 = fuse_gru_params(params, mxu_dtype=jnp.float32)
    h1 = jax.block_until_ready(gru_cell_forward(x0, h0, fused_f32))
    ref1 = gru_cell_reference(x0, h0, params)
    assert h1.shape == (B, HIDDEN_DIM)
    assert jnp.allclose(h1, ref1, atol=1e-4, rtol=1e-4), \
        float(jnp.max(jnp.abs(h1 - ref1)))

    # 2) T-step recurrence fused in-kernel, bf16 MXU operands, f32 gate math.
    #    Compared against a reference using the same bf16 matmul inputs.
    fused_bf16 = fuse_gru_params(params)  # bf16 weights (default)
    hs = jax.block_until_ready(gru_sequence_forward(xs, h0, fused_bf16, t_chunk=4))
    ref_hs = gru_sequence_reference(xs, h0, params, mxu_dtype=jnp.bfloat16)
    assert hs.shape == (T, B, HIDDEN_DIM)
    assert jnp.allclose(hs, ref_hs, atol=5e-3, rtol=5e-3), \
        float(jnp.max(jnp.abs(hs - ref_hs)))

    print("KERNEL_OK")
</pallas_src>

<mosaic_0001>
module attributes {stable_mosaic.version = 11 : i64} {
  func.func @_gru_seq_kernel(%arg0: i32, %arg1: memref<1x8x32xf32, #tpu.memory_space<vmem>>, %arg2: memref<8x128xf32, #tpu.memory_space<vmem>>, %arg3: memref<32x384xf32, #tpu.memory_space<vmem>>, %arg4: memref<128x384xf32, #tpu.memory_space<vmem>>, %arg5: memref<1x384xf32, #tpu.memory_space<vmem>>, %arg6: memref<1x8x128xf32, #tpu.memory_space<vmem>>, %arg7: memref<8x128xf32, #tpu.memory_space<vmem>>) attributes {dimension_semantics = [#tpu.dimension_semantics<arbitrary>], iteration_bounds = array<i64: 1>, scalar_prefetch = 0 : i64, scratch_operands = 1 : i64, tpu.core_type = #tpu.core_type<tc>, window_params = [{transform_indices = @transform_0, window_bounds = array<i64: 1, 8, 32>}, {pipeline_mode = #tpu.pipeline_mode<synchronous>, transform_indices = @transform_1, window_bounds = array<i64: 8, 128>}, {pipeline_mode = #tpu.pipeline_mode<synchronous>, transform_indices = @transform_2, window_bounds = array<i64: 32, 384>}, {pipeline_mode = #tpu.pipeline_mode<synchronous>, transform_indices = @transform_3, window_bounds = array<i64: 128, 384>}, {pipeline_mode = #tpu.pipeline_mode<synchronous>, transform_indices = @transform_4, window_bounds = array<i64: 1, 384>}, {transform_indices = @transform_5, window_bounds = array<i64: 1, 8, 128>}]} {
    %c0_i32 = arith.constant 0 : i32
    %0 = arith.cmpi eq, %arg0, %c0_i32 : i32
    %1 = arith.extui %0 : i1 to i32
    %c0_i32_0 = arith.constant 0 : i32
    %2 = arith.cmpi ne, %1, %c0_i32_0 : i32
    scf.if %2 {
      %c0_19 = arith.constant 0 : index
      %c0_20 = arith.constant 0 : index
      %41 = vector.load %arg2[%c0_19, %c0_20] : memref<8x128xf32, #tpu.memory_space<vmem>>, vector<8x128xf32>
      %c0_21 = arith.constant 0 : index
      %c0_22 = arith.constant 0 : index
      %42 = vector.load %arg7[%c0_21, %c0_22] : memref<8x128xf32, #tpu.memory_space<vmem>>, vector<8x128xf32>
      tpu.vector_store %arg7[%c0_21, %c0_22], %41 {strides = array<i32>} : memref<8x128xf32, #tpu.memory_space<vmem>>, vector<8x128xf32>,
    } else {
    }
    %c0 = arith.constant 0 : index
    %c0_1 = arith.constant 0 : index
    %c0_2 = arith.constant 0 : index
    %3 = vector.load %arg1[%c0, %c0_1, %c0_2] : memref<1x8x32xf32, #tpu.memory_space<vmem>>, vector<1x8x32xf32>
    %4 = vector.shape_cast %3 : vector<1x8x32xf32> to vector<8x32xf32>
    %c0_3 = arith.constant 0 : index
    %c0_4 = arith.constant 0 : index
    %5 = vector.load %arg3[%c0_3, %c0_4] : memref<32x384xf32, #tpu.memory_space<vmem>>, vector<32x384xf32>
    %cst = arith.constant dense<0.000000e+00> : vector<8x384xf32>
    %6 = tpu.matmul %4, %5, %cst {dimension_numbers = #tpu.dot_dimension_numbers<[1], [0], [0], [1], [0, 0, 1, 1], [], []>} : vector<8x32xf32>, vector<32x384xf32>, vector<8x384xf32> -> vector<8x384xf32>
    %c0_5 = arith.constant 0 : index
    %c0_6 = arith.constant 0 : index
    %7 = vector.load %arg5[%c0_5, %c0_6] : memref<1x384xf32, #tpu.memory_space<vmem>>, vector<1x384xf32>
    %8 = vector.broadcast %7 : vector<1x384xf32> to vector<8x384xf32>
    %9 = arith.addf %6, %8 : vector<8x384xf32>
    %c0_7 = arith.constant 0 : index
    %c0_8 = arith.constant 0 : index
    %10 = vector.load %arg4[%c0_7, %c0_8] : memref<128x384xf32, #tpu.memory_space<vmem>>, vector<128x384xf32>
    %c0_9 = arith.constant 0 : index
    %c0_10 = arith.constant 0 : index
    %11 = vector.load %arg7[%c0_9, %c0_10] : memref<8x128xf32, #tpu.memory_space<vmem>>, vector<8x128xf32>
    %cst_11 = arith.constant dense<0.000000e+00> : vector<8x384xf32>
    %12 = tpu.matmul %11, %10, %cst_11 {dimension_numbers = #tpu.dot_dimension_numbers<[1], [0], [0], [1], [0, 0, 1, 1], [], []>} : vector<8x128xf32>, vector<128x384xf32>, vector<8x384xf32> -> vector<8x384xf32>
    %13 = vector.extract_strided_slice %9 {offsets = [0, 0], sizes = [8, 128], strides = [1, 1]} : vector<8x384xf32> to vector<8x128xf32>
    %14 = vector.extract_strided_slice %12 {offsets = [0, 0], sizes = [8, 128], strides = [1, 1]} : vector<8x384xf32> to vector<8x128xf32>
    %15 = arith.addf %13, %14 : vector<8x128xf32>
    %16 = arith.negf %15 : vector<8x128xf32>
    %17 = math.exp %16 : vector<8x128xf32>
    %cst_12 = arith.constant 1.000000e+00 : f32
    %18 = vector.broadcast %cst_12 : f32 to vector<8x128xf32>
    %19 = arith.addf %18, %17 : vector<8x128xf32>
    %20 = arith.divf %18, %19 : vector<8x128xf32>
    %21 = vector.extract_strided_slice %9 {offsets = [0, 128], sizes = [8, 128], strides = [1, 1]} : vector<8x384xf32> to vector<8x128xf32>
    %22 = vector.extract_strided_slice %12 {offsets = [0, 128], sizes = [8, 128], strides = [1, 1]} : vector<8x384xf32> to vector<8x128xf32>
    %23 = arith.addf %21, %22 : vector<8x128xf32>
    %24 = arith.negf %23 : vector<8x128xf32>
    %25 = math.exp %24 : vector<8x128xf32>
    %cst_13 = arith.constant 1.000000e+00 : f32
    %26 = vector.broadcast %cst_13 : f32 to vector<8x128xf32>
    %27 = arith.addf %26, %25 : vector<8x128xf32>
    %28 = arith.divf %26, %27 : vector<8x128xf32>
    %29 = vector.extract_strided_slice %9 {offsets = [0, 256], sizes = [8, 128], strides = [1, 1]} : vector<8x384xf32> to vector<8x128xf32>
    %30 = vector.extract_strided_slice %12 {offsets = [0, 256], sizes = [8, 128], strides = [1, 1]} : vector<8x384xf32> to vector<8x128xf32>
    %31 = arith.mulf %20, %30 : vector<8x128xf32>
    %32 = arith.addf %29, %31 : vector<8x128xf32>
    %33 = math.tanh %32 : vector<8x128xf32>
    %34 = arith.subf %11, %33 : vector<8x128xf32>
    %35 = arith.mulf %28, %34 : vector<8x128xf32>
    %36 = arith.addf %33, %35 : vector<8x128xf32>
    %c0_14 = arith.constant 0 : index
    %c0_15 = arith.constant 0 : index
    %c0_16 = arith.constant 0 : index
    %37 = vector.load %arg6[%c0_14, %c0_15, %c0_16] : memref<1x8x128xf32, #tpu.memory_space<vmem>>, vector<1x8x128xf32>
    %38 = vector.shape_cast %37 : vector<1x8x128xf32> to vector<8x128xf32>
    %39 = vector.shape_cast %36 : vector<8x128xf32> to vector<1x8x128xf32>
    tpu.vector_store %arg6[%c0_14, %c0_15, %c0_16], %39 {strides = array<i32>} : memref<1x8x128xf32, #tpu.memory_space<vmem>>, vector<1x8x128xf32>,
    %c0_17 = arith.constant 0 : index
    %c0_18 = arith.constant 0 : index
    %40 = vector.load %arg7[%c0_17, %c0_18] : memref<8x128xf32, #tpu.memory_space<vmem>>, vector<8x128xf32>
    tpu.vector_store %arg7[%c0_17, %c0_18], %36 {strides = array<i32>} : memref<8x128xf32, #tpu.memory_space<vmem>>, vector<8x128xf32>,
    return
  }
  func.func @transform_0(%arg0: i32) -> (i32, i32, i32) {
    %c0_i32 = arith.constant 0 : i32
    %c0_i32_0 = arith.constant 0 : i32
    %c0_i32_1 = arith.constant 0 : i32
    return %arg0, %c0_i32, %c0_i32_0 : i32, i32, i32
  }
  func.func @transform_1(%arg0: i32) -> (i32, i32) {
    %c0_i32 = arith.constant 0 : i32
    %c0_i32_0 = arith.constant 0 : i32
    %c0_i32_1 = arith.constant 0 : i32
    return %c0_i32, %c0_i32_0 : i32, i32
  }
  func.func @transform_2(%arg0: i32) -> (i32, i32) {
    %c0_i32 = arith.constant 0 : i32
    %c0_i32_0 = arith.constant 0 : i32
    %c0_i32_1 = arith.constant 0 : i32
    return %c0_i32, %c0_i32_0 : i32, i32
  }
  func.func @transform_3(%arg0: i32) -> (i32, i32) {
    %c0_i32 = arith.constant 0 : i32
    %c0_i32_0 = arith.constant 0 : i32
    %c0_i32_1 = arith.constant 0 : i32
    return %c0_i32, %c0_i32_0 : i32, i32
  }
  func.func @transform_4(%arg0: i32) -> (i32, i32) {
    %c0_i32 = arith.constant 0 : i32
    %c0_i32_0 = arith.constant 0 : i32
    %c0_i32_1 = arith.constant 0 : i32
    return %c0_i32, %c0_i32_0 : i32, i32
  }
  func.func @transform_5(%arg0: i32) -> (i32, i32, i32) {
    %c0_i32 = arith.constant 0 : i32
    %c0_i32_0 = arith.constant 0 : i32
    %c0_i32_1 = arith.constant 0 : i32
    return %arg0, %c0_i32, %c0_i32_0 : i32, i32, i32
  }
}

</mosaic_0001>

<bundles_post_ra>
// kernel: tpu_custom_call.1
= control target key start
LH: loop header
LB: loop body
LE: loop exit
PB: predicated region body
PF: predicated region fallthrough
CT: control target
= control target key end

     0   :  { %10 = vsyncpa [#allocation4], 0  ;;  %s887_s0 = inlined_call_operand.hbm [shape: f32[1,8,32], index: 0, kind: input, shape index: {}]   ;;  %s888_s1 = inlined_call_operand.hbm [shape: f32[8,128], index: 1, kind: input, shape index: {}]   ;;  %s889_s2 = inlined_call_operand.hbm [shape: f32[32,384], index: 2, kind: input, shape index: {}]   ;;  %s890_s3 = inlined_call_operand.hbm [shape: f32[128,384], index: 3, kind: input, shape index: {}]   ;;  %s891_s4 = inlined_call_operand.vmem [shape: f32[1,384], index: 4, kind: input, shape index: {}]   ;;  %s892_s5 = inlined_call_operand.hbm [shape: f32[1,8,128], index: 5, kind: output, shape index: {}]  }
   0x1   :  { %11 = vsyncpa [#allocation7], 0 }
   0x2   :  { %12 = vsyncpa [#allocation10], 0 }
   0x3   :  { %13 = vsyncpa [#allocation5], 0  ;;  %s766_s18 = smov [#allocation6]   ;;  %s767_s20 = smov [#allocation3]  }
   0x4   :  { %s30_s19 = sshll.u32 %s766_s18, 4  ;;  %s20_s21 = sshll.u32 %s767_s20, 4  ;;  %s31_s19 = int_to_ptr.vmem [resolvable:$true] %s30_s19  ;;  %s21_s21 = int_to_ptr.vmem [resolvable:$true] %s20_s21 }
   0x5   :  { %s648_s24 = scalar_lea.hbm %s888_s1, 128 }
   0x6   :  { %p649_p0 = scmp.ne.s32.totalorder %s888_s1, %s648_s24  ;;  %p652_p1 = scmp.lt.u32.totalorder %s648_s24, %s888_s1 }
   0x8   :  { %p654_p2 = pnand %p652_p1, %p649_p0 }
   0xa   :  { %657 = shalt.err (!%p654_p2)
}
   0xb   :  { %s658_s29 = scalar_lea.vmem %s31_s19, 128  ;;  %p663_p4 = scmp.lt.s32.totalorder %s31_s19, %s31_s19 }
   0xc   :  { %p659_p3 = scmp.ne.s32.totalorder %s31_s19, %s658_s29  ;;  %p664_p5 = scmp.lt.s32.totalorder %s658_s29, %s658_s29 }
   0xe   :  { %p665_p6 = por %p664_p5, %p663_p4 }
  0x10   :  { %p666_p7 = pnand %p665_p6, %p659_p3 }
  0x12   :  { %669 = shalt.err (!%p666_p7)
}
  0x13   :  { %33 = dma.hbm_to_vmem [thread:$0]  %s888_s1, 128, %s31_s19, [#allocation7]  }
  0x14   :  { %s670_s9 = scalar_lea.hbm %s887_s0, 128 }
  0x15   :  { %p671_p8 = scmp.ne.s32.totalorder %s887_s0, %s670_s9  ;;  %p674_p9 = scmp.lt.u32.totalorder %s670_s9, %s887_s0 }
  0x17   :  { %p676_p10 = pnand %p674_p9, %p671_p8 }
  0x19   :  { %679 = shalt.err (!%p676_p10)
}
  0x1a   :  { %s680_s14 = scalar_lea.vmem %s21_s21, 128  ;;  %p685_p12 = scmp.lt.s32.totalorder %s21_s21, %s21_s21 }
  0x1b   :  { %p681_p11 = scmp.ne.s32.totalorder %s21_s21, %s680_s14  ;;  %p686_p13 = scmp.lt.s32.totalorder %s680_s14, %s680_s14 }
  0x1d   :  { %p687_p0 = por %p686_p13, %p685_p12 }
  0x1f   :  { %p688_p1 = pnand %p687_p0, %p681_p11 }
  0x21   :  { %691 = shalt.err (!%p688_p1)
}
  0x22   :  { %23 = dma.hbm_to_vmem [thread:$0]  %s887_s0, 128, %s21_s21, [#allocation4]  }
  0x23   :  { %s768_s16 = smov [#allocation8]   ;;  %s692_s20 = scalar_lea.hbm %s889_s2, 1536 }
  0x24   :  { %s39_s17 = sshll.u32 %s768_s16, 4  ;;  %p693_p2 = scmp.ne.s32.totalorder %s889_s2, %s692_s20  ;;  %s40_s17 = int_to_ptr.vmem [resolvable:$true] %s39_s17 }
  0x25   :  { %p696_p3 = scmp.lt.u32.totalorder %s692_s20, %s889_s2 }
  0x27   :  { %p698_p4 = pnand %p696_p3, %p693_p2 }
  0x29   :  { %701 = shalt.err (!%p698_p4)
}
  0x2a   :  { %s702_s26 = scalar_lea.vmem %s40_s17, 1536  ;;  %p707_p6 = scmp.lt.s32.totalorder %s40_s17, %s40_s17 }
  0x2b   :  { %p703_p5 = scmp.ne.s32.totalorder %s40_s17, %s702_s26  ;;  %p708_p7 = scmp.lt.s32.totalorder %s702_s26, %s702_s26 }
  0x2d   :  { %p709_p8 = por %p708_p7, %p707_p6 }
  0x2f   :  { %p710_p9 = pnand %p709_p8, %p703_p5 }
  0x31   :  { %713 = shalt.err (!%p710_p9)
}
  0x32   :  { %s769_s0 = smov 384   ;;  %s770_s21 = smov 24  }
  0x33   :  { %45 = dma.hbm_to_vmem [thread:$0]  %s889_s2, 1536, %s40_s17, [#allocation7], %s769_s0, %s769_s0, %s770_s21  }
  0x34   :  { %s771_s29 = smov [#allocation9]   ;;  %s714_s8 = scalar_lea.hbm %s890_s3, 6144 }
  0x35   :  { %s51_s30 = sshll.u32 %s771_s29, 4  ;;  %p715_p10 = scmp.ne.s32.totalorder %s890_s3, %s714_s8  ;;  %s52_s30 = int_to_ptr.vmem [resolvable:$true] %s51_s30 }
  0x36   :  { %p718_p11 = scmp.lt.u32.totalorder %s714_s8, %s890_s3 }
  0x38   :  { %p720_p12 = pnand %p718_p11, %p715_p10 }
  0x3a   :  { %723 = shalt.err (!%p720_p12)
}
  0x3b   :  { %s724_s13 = scalar_lea.vmem %s52_s30, 6144  ;;  %p729_p0 = scmp.lt.s32.totalorder %s52_s30, %s52_s30 }
  0x3c   :  { %p725_p13 = scmp.ne.s32.totalorder %s52_s30, %s724_s13  ;;  %p730_p1 = scmp.lt.s32.totalorder %s724_s13, %s724_s13 }
  0x3e   :  { %p731_p2 = por %p730_p1, %p729_p0 }
  0x40   :  { %p732_p3 = pnand %p731_p2, %p725_p13 }
  0x42   :  { %735 = shalt.err (!%p732_p3)
}
  0x43   :  { %57 = dma.hbm_to_vmem [thread:$0]  %s890_s3, 6144, %s52_s30, [#allocation10], %s769_s0, %s769_s0, %s770_s21  }
  0x44   :  { %758 = dma.done.wait [#allocation4], 128  }
  0x45   :  { %759 = vsyncadd [#allocation4], 4294967168 }
  0x46   :  { %760 = dma.done.wait [#allocation7], 1664  }
  0x47   :  { %761 = vsyncadd [#allocation7], 4294965632 }
  0x48   :  { %762 = dma.done.wait [#allocation10], 6144  }
  0x49   :  { %763 = vsyncadd [#allocation10], 4294961152  ;;  %v772_v0 = vmov 0.0   ;;  %v773_v1 = vmov 0.0|0.0   ;;  %vm774_vm0 = vmmov 0   ;;  %v80_v2 = vld [vmem:[#allocation8 + $0x8] sm:$0xff] }
  0x4a   :  { %176 = vmatprep.mubr.f32.mxu0 %v772_v0  ;;  %562 = vmatprep.subr.bf16.mxu1 %v773_v1  ;;  %v83_v3 = vld [vmem:[#allocation8 + $0x20] sm:$0xff]  ;;  %v82_v6 = vld [vmem:[#allocation8 + $0x18] sm:$0xff]  ;;  %v89_v8 = vld [vmem:[#allocation8 + $0x50] sm:$0xff]  ;;  %vm108_vm1 = vcmask 261120  }
  0x4b   :  { %516 = vmatprep.mubr.msk.f32.mxu1 %vm774_vm0, %v772_v0  ;;  %v79_v4 = vld [vmem:[#allocation8] sm:$0xff]  ;;  %v554_v5 = vpack.c.bf16 %v83_v3, %v80_v2  ;;  %v86_v7 = vld [vmem:[#allocation8 + $0x38] sm:$0xff]  ;;  %v85_v11 = vld [vmem:[#allocation8 + $0x30] sm:$0xff] }
  0x4c   :  { %v556_v9 = vpack.c.bf16 %v82_v6, %v79_v4  ;;  %v558_v10 = vpack.c.bf16 %v89_v8, %v86_v7  ;;  %v88_v12 = vld [vmem:[#allocation8 + $0x48] sm:$0xff]  ;;  %v257_v14 = vld [vmem:[#allocation9 + $0x20] sm:$0xff]  ;;  %v256_v18 = vld [vmem:[#allocation9 + $0x18] sm:$0xff] }
  0x4d   :  { %v254_v13 = vld [vmem:[#allocation9 + $0x8] sm:$0xff]  ;;  %555 = vmatprep.subr.bf16.mxu0 %v554_v5  ;;  %v560_v15 = vpack.c.bf16 %v88_v12, %v85_v11  ;;  %v253_v17 = vld [vmem:[#allocation9] sm:$0xff]  ;;  %v260_v19 = vld [vmem:[#allocation9 + $0x38] sm:$0xff] }
  0x4e   :  { %557 = vmatpush1.bf16.msra.mxu0 %v556_v9  ;;  %v568_v16 = vpack.c.bf16 %v257_v14, %v254_v13  ;;  %v263_v20 = vld [vmem:[#allocation9 + $0x50] sm:$0xff]  ;;  %v570_v22 = vpack.c.bf16 %v256_v18, %v253_v17  ;;  %v262_v25 = vld [vmem:[#allocation9 + $0x48] sm:$0xff]  ;;  %v269_v28 = vld [vmem:[#allocation9 + $0x80] sm:$0xff] }
  0x4f   :  { %559 = vmatprep.subr.bf16.mxu0 %v558_v10  ;;  %v78_v21 = vld [vmem:[#allocation3] sm:$0xff]  ;;  %v572_v23 = vpack.c.bf16 %v263_v20, %v260_v19  ;;  %v266_v27 = vld [vmem:[#allocation9 + $0x68] sm:$0xff]  ;;  %v87_v31 = vld [vmem:[#allocation8 + $0x40] sm:$0xff] }
  0x50   :  { %v259_v24 = vld [vmem:[#allocation9 + $0x30] sm:$0xff]  ;;  %v84_v29 = vld [vmem:[#allocation8 + $0x28] sm:$0xff]  ;;  %v90_v33 = vld [vmem:[#allocation8 + $0x58] sm:$0xff]  ;;  %v576_v34 = vpack.c.bf16 %v269_v28, %v266_v27 }
  0x51   :  { %v81_v26 = vld [vmem:[#allocation8 + $0x10] sm:$0xff]  ;;  %v574_v32 = vpack.c.bf16 %v262_v25, %v259_v24  ;;  %v265_v35 = vld [vmem:[#allocation9 + $0x60] sm:$0xff]  ;;  %v268_v36 = vld [vmem:[#allocation9 + $0x78] sm:$0xff]  ;;  %v566_v38 = vpack.c.bf16 %v90_v33, %v87_v31  ;;  %v93_v33 = vlaneseq }
  0x52   :  { %561 = vmatpush1.bf16.msra.mxu0 %v560_v15  ;;  %v563_v30 = vpack.c.bf16 %v84_v29, %v81_v26  ;;  %v272_v37 = vld [vmem:[#allocation9 + $0x98] sm:$0xff]  ;;  %v275_v39 = vld [vmem:[#allocation9 + $0xb0] sm:$0xff]  ;;  %v258_v41 = vld [vmem:[#allocation9 + $0x28] sm:$0xff]  ;;  %v578_v42 = vpack.c.bf16 %v268_v36, %v265_v35 }
  0x53   :  { %569 = vmatprep.subr.bf16.mxu0 %v568_v16  ;;  %v255_v40 = vld [vmem:[#allocation9 + $0x10] sm:$0xff]  ;;  %v580_v43 = vpack.c.bf16 %v275_v39, %v272_v37  ;;  %v274_v45 = vld [vmem:[#allocation9 + $0xa8] sm:$0xff]  ;;  %v281_v48 = vld [vmem:[#allocation9 + $0xe0] sm:$0xff] }
  0x54   :  { %564 = vmatpush3.bf16.msra.mxu1 %v563_v30  ;;  %v271_v44 = vld [vmem:[#allocation9 + $0x90] sm:$0xff]  ;;  %v278_v46 = vld [vmem:[#allocation9 + $0xc8] sm:$0xff]  ;;  %v601_v47 = vpack.c.bf16 %v258_v41, %v255_v40  ;;  %v261_v49 = vld [vmem:[#allocation9 + $0x40] sm:$0xff] }
  0x55   :  { %482 = vmatmul.mubr.msk.f32.vlgmr.msra.gmra.mrb[0].mxu0 %vm108_vm1, %v78_v21  ;;  %565 = vmatprep.subr.bf16.mxu1 %v773_v1  ;;  %v264_v50 = vld [vmem:[#allocation9 + $0x58] sm:$0xff]  ;;  %v582_v51 = vpack.c.bf16 %v274_v45, %v271_v44  ;;  %v584_v52 = vpack.c.bf16 %v281_v48, %v278_v46  ;;  %v277_v53 = vld [vmem:[#allocation9 + $0xc0] sm:$0xff]  ;;  %v287_v57 = vld [vmem:[#allocation9 + $0x110] sm:$0xff] }
  0x56   :  { %571 = vmatpush1.bf16.msra.mxu0 %v570_v22  ;;  %366 = vmatprep.mubr.f32.mxu0 %v772_v0  ;;  %v280_v54 = vld [vmem:[#allocation9 + $0xd8] sm:$0xff]  ;;  %v604_v56 = vpack.c.bf16 %v264_v50, %v261_v49  ;;  %v267_v58 = vld [vmem:[#allocation9 + $0x70] sm:$0xff]  ;;  %v270_v59 = vld [vmem:[#allocation9 + $0x88] sm:$0xff] }
  0x57   :  { %573 = vmatprep.subr.bf16.mxu0 %v572_v23  ;;  %v284_v55 = vld [vmem:[#allocation9 + $0xf8] sm:$0xff]  ;;  %v586_v60 = vpack.c.bf16 %v280_v54, %v277_v53  ;;  %v283_v62 = vld [vmem:[#allocation9 + $0xf0] sm:$0xff]  ;;  %v286_v63 = vld [vmem:[#allocation9 + $0x108] sm:$0xff]  ;;  %v607_v3 = vpack.c.bf16 %v270_v59, %v267_v58 }
  0x58   :  { %567 = vmatpush3.bf16.msra.mxu1 %v566_v38  ;;  %v588_v61 = vpack.c.bf16 %v287_v57, %v284_v55  ;;  %v290_v2 = vld [vmem:[#allocation9 + $0x128] sm:$0xff]  ;;  %v293_v4 = vld [vmem:[#allocation9 + $0x140] sm:$0xff]  ;;  %v276_v6 = vld [vmem:[#allocation9 + $0xb8] sm:$0xff]  ;;  %v590_v7 = vpack.c.bf16 %v286_v63, %v283_v62 }
  0x59   :  { %600 = vmatprep.subr.bf16.mxu1 %v773_v1  ;;  %v273_v5 = vld [vmem:[#allocation9 + $0xa0] sm:$0xff]  ;;  %v592_v8 = vpack.c.bf16 %v293_v4, %v290_v2  ;;  %v296_v10 = vld [vmem:[#allocation9 + $0x158] sm:$0xff]  ;;  %v299_v12 = vld [vmem:[#allocation9 + $0x170] sm:$0xff] }
  0x5a   :  { %575 = vmatpush1.bf16.msra.mxu0 %v574_v32  ;;  %v289_v9 = vld [vmem:[#allocation9 + $0x120] sm:$0xff]  ;;  %v610_v11 = vpack.c.bf16 %v276_v6, %v273_v5  ;;  %v279_v13 = vld [vmem:[#allocation9 + $0xd0] sm:$0xff]  ;;  %v282_v14 = vld [vmem:[#allocation9 + $0xe8] sm:$0xff]  ;;  %v596_v16 = vpack.c.bf16 %v299_v12, %v296_v10 }
  0x5b   :  { %577 = vmatprep.subr.bf16.mxu0 %v576_v34  ;;  %517 = vmatmul.mubr.msk.f32.vlgmr.msra.gmra.mrb[0].mxu1 %vm108_vm1, %v78_v21  ;;  %v295_v17 = vld [vmem:[#allocation9 + $0x150] sm:$0xff]  ;;  %v298_v18 = vld [vmem:[#allocation9 + $0x168] sm:$0xff]  ;;  %v613_v19 = vpack.c.bf16 %v282_v14, %v279_v13  ;;  %v285_v20 = vld [vmem:[#allocation9 + $0x100] sm:$0xff]  ;;  %v94_v34 = vshrl.u32 %v93_v33, 7 }
  0x5c   :  { %602 = vmatpush3.bf16.msra.mxu1 %v601_v47  ;;  %551 = vmatprep.mubr.msk.f32.mxu1 %vm774_vm0, %v772_v0  ;;  %v292_v0 = vld [vmem:[#allocation9 + $0x138] sm:$0xff]  ;;  %v598_v22 = vpack.c.bf16 %v298_v18, %v295_v17  ;;  %v291_v24 = vld [vmem:[#allocation9 + $0x130] sm:$0xff]  ;;  %v294_v25 = vld [vmem:[#allocation9 + $0x148] sm:$0xff] }
  0x5d   :  { %603 = vmatprep.subr.bf16.mxu1 %v773_v1  ;;  %v594_v15 = vpack.c.bf16 %v292_v0, %v289_v9  ;;  %v288_v21 = vld [vmem:[#allocation9 + $0x118] sm:$0xff]  ;;  %v619_v27 = vpack.c.bf16 %v294_v25, %v291_v24  ;;  %v297_v28 = vld [vmem:[#allocation9 + $0x160] sm:$0xff]  ;;  %v95_v35 = vsub.s32 0, %v94_v34  ;;  %v91_v36 = vld [vmem:[%s891_s4] sm:$0x7]  ;;  %v99_v40 = vsub.s32 1, %v94_v34 }
  0x5e   :  { %579 = vmatpush1.bf16.msra.mxu0 %v578_v42  ;;  %v616_v23 = vpack.c.bf16 %v288_v21, %v285_v20  ;;  %v76_v26 = vld [vmem:[#allocation6] sm:$0xff]  ;;  %v103_v49 = vsub.s32 2, %v94_v34  ;;  %s775_s4 = smov [#allocation11]  }
  0x5f   :  { %581 = vmatprep.subr.bf16.mxu0 %v580_v43  ;;  %v300_v29 = vld [vmem:[#allocation9 + $0x178] sm:$0xff]  ;;  %v96_v37 = vrot.slane %v91_v36, %v95_v35  ;;  %v100_v43 = vrot.slane %v91_v36, %v99_v40  ;;  %s471_s15 = sshll.u32 %s775_s4, 4  ;;  %s472_s15 = int_to_ptr.vmem [resolvable:$true] %s471_s15 }
  0x60   :  { %605 = vmatpush3.bf16.msra.mxu1 %v604_v56  ;;  %v622_v30 = vpack.c.bf16 %v300_v29, %v297_v28  ;;  %v104_v50 = vrot.slane %v91_v36, %v103_v49  ;;  %s736_s16 = scalar_lea.vmem %s472_s15, 128  ;;  %p741_p5 = scmp.lt.s32.totalorder %s472_s15, %s472_s15 }
  0x61   :  { %606 = vmatprep.subr.bf16.mxu1 %v773_v1  ;;  %p737_p4 = scmp.ne.s32.totalorder %s472_s15, %s736_s16  ;;  %p742_p6 = scmp.lt.s32.totalorder %s736_s16, %s736_s16 }
  0x62   :  { %583 = vmatpush1.bf16.msra.mxu0 %v582_v51 }
  0x63   :  { %585 = vmatprep.subr.bf16.mxu0 %v584_v52  ;;  %p743_p7 = por %p742_p6, %p741_p5 }
  0x64   :  { %608 = vmatpush3.bf16.msra.mxu1 %v607_v3 }
  0x65   :  { %609 = vmatprep.subr.bf16.mxu1 %v773_v1  ;;  %p744_p8 = pnand %p743_p7, %p737_p4 }
  0x66   :  { %587 = vmatpush1.bf16.msra.mxu0 %v586_v60 }
  0x67   :  { %589 = vmatprep.subr.bf16.mxu0 %v588_v61 }
  0x68   :  { %611 = vmatpush3.bf16.msra.mxu1 %v610_v11 }
  0x69   :  { %612 = vmatprep.subr.bf16.mxu1 %v773_v1 }
  0x6a   :  { %591 = vmatpush1.bf16.msra.mxu0 %v590_v7 }
  0x6b   :  { %593 = vmatprep.subr.bf16.mxu0 %v592_v8 }
  0x6c   :  { %614 = vmatpush3.bf16.msra.mxu1 %v613_v19 }
  0x6d   :  { %615 = vmatprep.subr.bf16.mxu1 %v773_v1 }
  0x6e   :  { %595 = vmatpush1.bf16.msra.mxu0 %v594_v15 }
  0x6f   :  { %597 = vmatprep.subr.bf16.mxu0 %v596_v16 }
  0x70   :  { %617 = vmatpush3.bf16.msra.mxu1 %v616_v23 }
  0x71   :  { %618 = vmatprep.subr.bf16.mxu1 %v773_v1 }
  0x72   :  { %599 = vmatpush1.bf16.msra.mxu0 %v598_v22 }
  0x74   :  { %620 = vmatpush3.bf16.msra.mxu1 %v619_v27 }
  0x75   :  { %367 = vmatmul.mubr.f32.vlgmr.msra.gmra.mrb[0].mxu0 %v76_v26  ;;  %621 = vmatprep.subr.bf16.mxu1 %v773_v1 }
  0x78   :  { %623 = vmatpush3.bf16.msra.mxu1 %v622_v30 }
  0x7b   :  { %552 = vmatmul.mubr.f32.vlgmr.msra.gmra.mrb[2].mxu1 %v76_v26 }
 0x12e   :  { %v249_v31 = vpop.f32.mrb[0].mxu1 }
 0x12f   :  { %v518_v32 = vpop.f32.mrb[1].mxu1  ;;  %v250_v53 = vadd.f32 %v249_v31, %v104_v50 }
 0x148   :  { %v368_v38 = vpop.f32.mrb[0].mxu0 }
 0x149   :  { %v624_v39 = vadd.f32 %v368_v38, %v96_v37  ;;  %v370_v41 = vpop.f32.mrb[1].mxu0 }
 0x14a   :  { %v625_v1 = vadd.f32 %v370_v41, %v100_v43 }
 0x14b   :  { %v484_v42 = vmul.f32 -1.442695, %v624_v39 }
 0x14c   :  { %v485_v46 = vmul.f32 -1.442695, %v625_v1 }
 0x14d   :  { %638 = vpow2.f32 %v484_v42 }
 0x14e   :  { %v439_v44 = vpop.f32.mrb[2].mxu1  ;;  %640 = vpow2.f32 %v485_v46 }
 0x14f   :  { %v553_v45 = vpop.f32.mrb[3].mxu1 }
 0x157   :  { %v639_v47 = vpop.eup %638 }
 0x158   :  { %v447_v48 = vadd.f32 1.0, %v639_v47  ;;  %v641_v51 = vpop.eup %640 }
 0x159   :  { %v454_v55 = vadd.f32 1.0, %v641_v51 }
 0x15a   :  { %642 = vrcp.f32 %v447_v48 }
 0x164   :  { %v643_v52 = vpop.eup %642 }
 0x165   :  { %v457_v54 = vmul.f32 %v643_v52, %v439_v44 }
 0x167   :  { %v458_v56 = vadd.f32 %v457_v54, %v250_v53 }
 0x169   :  { %644 = vtanh.f32 %v458_v56 }
 0x16a   :  { %646 = vrcp.f32 %v454_v55 }
 0x173   :  { %v645_v57 = vpop.eup %644 }
 0x174   :  { %v460_v58 = vsub.f32 %v76_v26, %v645_v57  ;;  %v647_v59 = vpop.eup %646 }
 0x176   :  { %v461_v60 = vmul.f32 %v647_v59, %v460_v58 }
 0x178   :  { %v462_v61 = vadd.f32 %v645_v57, %v461_v60 }
 0x17a   :  { %463 = vst [vmem:[#allocation11] sm:$0xff] %v462_v61 }
 0x17b   :  { %747 = shalt.err (!%p744_p8)
}
 0x17c   :  { %s748_s19 = scalar_lea.hbm %s892_s5, 128 }
 0x17d   :  { %p749_p9 = scmp.ne.s32.totalorder %s892_s5, %s748_s19  ;;  %p752_p10 = scmp.lt.u32.totalorder %s748_s19, %s892_s5 }
 0x17f   :  { %p754_p11 = pnand %p752_p10, %p749_p9 }
 0x181   :  { %757 = shalt.err (!%p754_p11)
}
 0x182   :  { %474 = dma.vmem_to_hbm [thread:$0]  %s472_s15, 128, %s892_s5, [#allocation5]  }
 0x183   :  { %764 = dma.done.wait [#allocation5], 128  }
 0x184   :  { %765 = vsyncadd [#allocation5], 4294967168 }
 0x185   :  { %478 = vsyncpa [#allocation4], 1 }
 0x186   :  { %479 = vsyncpa [#allocation7], 1 }
 0x187   :  { %480 = vsyncpa [#allocation10], 1 }
 0x188   :  { %481 = vsyncpa [#allocation5], 1 }

</bundles_post_ra>
